<compile_context>
chip_gen: v7x
topology: tpu7x:2x2x1
jax: 0.10.0
libtpu: 0.0.40
codegen_flags: <defaults>
</compile_context>

<pallas_src>
import functools

import jax
import jax.numpy as jnp
from jax.experimental import pallas as pl
from jax.experimental.pallas import tpu as pltpu

LANE = 128


def _round_up(x, m):
    return ((x + m - 1) // m) * m


def _cdiv(a, b):
    return (a + b - 1) // b


# ---------------------------------------------------------------------------
# Kernel: encoder MLP + fused (mu | tanh(mu) [| clipped logstd]) head slab
# ---------------------------------------------------------------------------
def _normal_policy_kernel(
    x_ref, w1_ref, b1_ref, w2_ref, b2_ref, wh_ref, bh_ref, out_ref,
    *, action_size, min_logstd, max_logstd, has_logstd, compute_dtype,
):
    # Encoder: 2-layer MLP + ReLU. x is DMA'd in its original dtype and cast
    # here (hidden under the matmul) -> no separate wrapper cast pass.
    h = jnp.dot(x_ref[...].astype(compute_dtype), w1_ref[...],
                preferred_element_type=jnp.float32)
    h = jnp.maximum(h + b1_ref[...], 0.0)
    h = jnp.dot(h.astype(compute_dtype), w2_ref[...],
                preferred_element_type=jnp.float32)
    h = jnp.maximum(h + b2_ref[...], 0.0)

    # Fused heads: one packed matmul -> [ mu | mu | (logstd) | pad ] slab.
    head = jnp.dot(h.astype(compute_dtype), wh_ref[...],
                   preferred_element_type=jnp.float32) + bh_ref[...]

    a = action_size
    lane = jax.lax.broadcasted_iota(jnp.int32, (1, head.shape[-1]), 1)
    if has_logstd:
        clip_band = jnp.logical_and(lane >= 2 * a, lane < 3 * a)
        head = jnp.where(clip_band,
                         jnp.clip(head, min_logstd, max_logstd), head)
    tanh_band = jnp.logical_and(lane >= a, lane < 2 * a)
    out = jnp.where(tanh_band, jnp.tanh(head), head)
    out_ref[...] = out.astype(out_ref.dtype)   # single lane-dense store


# ---------------------------------------------------------------------------
# One-time parameter packing (hoisted out of the per-call path)
# ---------------------------------------------------------------------------
def pack_params(params, *, use_std_parameter, compute_dtype=jnp.bfloat16):
    hidden = params["w1"].shape[1]
    A = params["wmu"].shape[1]
    bands = 2 if use_std_parameter else 3           # drop dead logstd band
    NP = max(LANE, _round_up(bands * A, LANE))
    # TODO(synk): for A >= ~43 the duplicated mu band inflates head-matmul N;
    # pack [mu | logstd] only and build tanh(mu) via pltpu.roll in the kernel.
    wh = jnp.zeros((hidden, NP), jnp.float32)
    bh = jnp.zeros((1, NP), jnp.float32)
    wh = wh.at[:, 0:A].set(params["wmu"]).at[:, A:2 * A].set(params["wmu"])
    bh = bh.at[:, 0:A].set(params["bmu"]).at[:, A:2 * A].set(params["bmu"])
    if not use_std_parameter:
        wh = wh.at[:, 2 * A:3 * A].set(params["wls"])
        bh = bh.at[:, 2 * A:3 * A].set(params["bls"])
    return dict(
        w1=params["w1"].astype(compute_dtype),
        b1=params["b1"].astype(jnp.float32),
        w2=params["w2"].astype(compute_dtype),
        b2=params["b2"].astype(jnp.float32),
        wh=wh.astype(compute_dtype),
        bh=bh,
        logstd_param=params["logstd_param"],
        action_size=A, hidden=hidden, np_width=NP,
        use_std_parameter=use_std_parameter,
        compute_dtype=compute_dtype,
    )


# ---------------------------------------------------------------------------
# Forward wrapper
# ---------------------------------------------------------------------------
def normal_policy_forward(
    x, packed, *, min_logstd, max_logstd,
    batch_tile=1024,           # v5e/v6e: 1024-2048; v7x: 512-1024
    min_grid_steps=2,          # let both v7x TensorCores get a tile
    out_dtype=jnp.bfloat16,    # bf16 slab writeback (f32 MXU accumulation)
    single_buffer_weights=True,
):
    """Returns (mu, squashed_mu, clipped_logstd) like d3rlpy's ActionOutput."""
    B, obs_dim = x.shape
    A = packed["action_size"]
    hidden = packed["hidden"]
    NP = packed["np_width"]
    use_std_parameter = packed["use_std_parameter"]
    compute_dtype = packed["compute_dtype"]

    # ---- batch tiling: TB multiple of 8; ragged batches pad < 8*n_steps rows
    B8 = _round_up(B, 8)
    tb_req = max(8, (min(batch_tile, B8) // 8) * 8)
    n_steps = _cdiv(B8, tb_req)
    if n_steps < min_grid_steps and B8 >= 8 * min_grid_steps:
        n_steps = min_grid_steps
    TB = _round_up(_cdiv(B8, n_steps), 8)
    B_pad = n_steps * TB

    x_p = x if B_pad == B else jnp.pad(x, ((0, B_pad - B), (0, 0)))

    kernel = functools.partial(
        _normal_policy_kernel,
        action_size=A, min_logstd=float(min_logstd),
        max_logstd=float(max_logstd),
        has_logstd=not use_std_parameter, compute_dtype=compute_dtype,
    )

    w_bytes = int(
        packed["w1"].size * packed["w1"].dtype.itemsize
        + packed["w2"].size * packed["w2"].dtype.itemsize
        + packed["wh"].size * packed["wh"].dtype.itemsize
        + (packed["b1"].size + packed["b2"].size + packed["bh"].size) * 4)
    out_itemsize = jnp.dtype(out_dtype).itemsize
    cost = pl.CostEstimate(
        flops=2 * B_pad * (obs_dim * hidden + hidden * hidden + hidden * NP),
        transcendentals=B_pad * NP,
        bytes_accessed=(B_pad * obs_dim * x_p.dtype.itemsize
                        + w_bytes + B_pad * NP * out_itemsize),
    )

    def run(single_buffer):
        buf = 1 if single_buffer else 2
        tile_io = TB * (obs_dim * x_p.dtype.itemsize + NP * out_itemsize)
        vmem_limit = int(min(100 * 2**20,
                             max(32 * 2**20,
                                 buf * w_bytes + 2 * tile_io + (8 << 20))))

        def wspec(shape):
            idx = lambda i: (0,) * len(shape)
            if single_buffer:
                # resident weights -> single buffer, halves weight VMEM
                return pl.BlockSpec(shape, idx, pipeline_mode=pl.Buffered(1))
            return pl.BlockSpec(shape, idx)

        return pl.pallas_call(
            kernel,
            out_shape=jax.ShapeDtypeStruct((B_pad, NP), out_dtype),
            grid=(n_steps,),
            in_specs=[
                pl.BlockSpec((TB, obs_dim), lambda i: (i, 0)),  # x (batch-tiled)
                wspec((obs_dim, hidden)),                       # w1 (resident)
                wspec((1, hidden)),                             # b1
                wspec((hidden, hidden)),                        # w2
                wspec((1, hidden)),                             # b2
                wspec((hidden, NP)),                            # packed head W
                wspec((1, NP)),                                 # packed head b
            ],
            out_specs=pl.BlockSpec((TB, NP), lambda i: (i, 0)),
            compiler_params=pltpu.CompilerParams(
                dimension_semantics=("parallel",),
                vmem_limit_bytes=vmem_limit,
            ),
            cost_estimate=cost,
        )(x_p, packed["w1"], packed["b1"], packed["w2"], packed["b2"],
          packed["wh"], packed["bh"])

    try:
        out = run(single_buffer_weights)
    except Exception:
        # pl.Buffered(1) unsupported in this build -> default double buffering.
        if not single_buffer_weights:
            raise
        out = run(False)

    mu = out[:B, 0:A]
    squashed_mu = out[:B, A:2 * A]
    if use_std_parameter:
        # batch-independent (1, A) parameter path -> plain JAX (matches torch).
        logstd = min_logstd + jax.nn.sigmoid(packed["logstd_param"]) * (
            max_logstd - min_logstd)
    else:
        logstd = out[:B, 2 * A:3 * A]
    return mu, squashed_mu, logstd


# ---------------------------------------------------------------------------
# Deterministic parameter init (PyTorch nn.Linear-style uniform)
# ---------------------------------------------------------------------------
def _linear_init(key, fan_in, fan_out):
    kw, kb = jax.random.split(key)
    bound = 1.0 / jnp.sqrt(fan_in)
    w = jax.random.uniform(kw, (fan_in, fan_out), jnp.float32, -bound, bound)
    b = jax.random.uniform(kb, (1, fan_out), jnp.float32, -bound, bound)
    return w, b


def make_params(key, obs_dim, hidden_size, action_size):
    k1, k2, k3, k4 = jax.random.split(key, 4)
    w1, b1 = _linear_init(k1, obs_dim, hidden_size)
    w2, b2 = _linear_init(k2, hidden_size, hidden_size)
    wmu, bmu = _linear_init(k3, hidden_size, action_size)
    wls, bls = _linear_init(k4, hidden_size, action_size)
    logstd_param = jnp.zeros((1, action_size), jnp.float32)
    return dict(w1=w1, b1=b1, w2=w2, b2=b2,
                wmu=wmu, bmu=bmu, wls=wls, bls=bls,
                logstd_param=logstd_param)


# ---------------------------------------------------------------------------
# Reference (pure JAX, mirroring bf16 operand casts) for sanity-checking
# ---------------------------------------------------------------------------
def reference_forward(x, p, *, use_std_parameter, min_logstd, max_logstd,
                      compute_dtype=jnp.bfloat16):
    f32 = jnp.float32
    cd = compute_dtype
    h = jnp.dot(x.astype(cd), p["w1"].astype(cd), preferred_element_type=f32)
    h = jnp.maximum(h + p["b1"], 0.0)
    h = jnp.dot(h.astype(cd), p["w2"].astype(cd), preferred_element_type=f32)
    h = jnp.maximum(h + p["b2"], 0.0)
    mu = jnp.dot(h.astype(cd), p["wmu"].astype(cd),
                 preferred_element_type=f32) + p["bmu"]
    if use_std_parameter:
        ls = min_logstd + jax.nn.sigmoid(p["logstd_param"]) * (max_logstd - min_logstd)
    else:
        ls = jnp.dot(h.astype(cd), p["wls"].astype(cd),
                     preferred_element_type=f32) + p["bls"]
        ls = jnp.clip(ls, min_logstd, max_logstd)
    return mu, jnp.tanh(mu), ls


# ---------------------------------------------------------------------------
if __name__ == "__main__":
    key = jax.random.PRNGKey(0)
    kp, kx1, kx2, kx3 = jax.random.split(key, 4)

    OBS, HIDDEN, ACTION = 16, 32, 4
    MIN_LOGSTD, MAX_LOGSTD = -20.0, 2.0
    params = make_params(kp, OBS, HIDDEN, ACTION)

    # one-time packing (per use_std_parameter mode)
    packed = {usp: pack_params(params, use_std_parameter=usp)
              for usp in (False, True)}

    # case 1: tiny batch, single grid step
    # case 2: ragged batch, small tile -> multi-step grid + row padding
    # case 3: medium batch, default tile -> forced >=2 grid steps (v7x path)
    cases = [
        (jax.random.normal(kx1, (8, OBS), jnp.float32), 1024),
        (jax.random.normal(kx2, (50, OBS), jnp.float32), 16),
        (jax.random.normal(kx3, (200, OBS), jnp.float32), 1024),
    ]

    ok = True
    for x, tb in cases:
        for usp in (False, True):
            mu, sq_mu, logstd = normal_policy_forward(
                x, packed[usp],
                min_logstd=MIN_LOGSTD, max_logstd=MAX_LOGSTD,
                batch_tile=tb)
            jax.block_until_ready((mu, sq_mu, logstd))

            r_mu, r_sq, r_ls = reference_forward(
                x, params, use_std_parameter=usp,
                min_logstd=MIN_LOGSTD, max_logstd=MAX_LOGSTD)
            ok &= bool(jnp.allclose(mu.astype(jnp.float32), r_mu,
                                    atol=3e-2, rtol=3e-2))
            ok &= bool(jnp.allclose(sq_mu.astype(jnp.float32), r_sq,
                                    atol=3e-2, rtol=3e-2))
            ok &= bool(jnp.allclose(logstd.astype(jnp.float32), r_ls,
                                    atol=3e-2, rtol=3e-2))
            ok &= (mu.shape == r_mu.shape and sq_mu.shape == r_sq.shape
                   and logstd.shape == r_ls.shape)

    if ok:
        print("KERNEL_OK")
    else:
        print("KERNEL_MISMATCH")
</pallas_src>

<mosaic_0001>
module attributes {stable_mosaic.version = 11 : i64} {
  func.func @_normal_policy_kernel(%arg0: i32, %arg1: memref<8x16xf32, #tpu.memory_space<vmem>>, %arg2: memref<16x32xbf16, #tpu.memory_space<vmem>>, %arg3: memref<1x32xf32, #tpu.memory_space<vmem>>, %arg4: memref<32x32xbf16, #tpu.memory_space<vmem>>, %arg5: memref<1x32xf32, #tpu.memory_space<vmem>>, %arg6: memref<32x128xbf16, #tpu.memory_space<vmem>>, %arg7: memref<1x128xf32, #tpu.memory_space<vmem>>, %arg8: memref<8x128xbf16, #tpu.memory_space<vmem>>) attributes {dimension_semantics = [#tpu.dimension_semantics<parallel>], iteration_bounds = array<i64: 1>, scalar_prefetch = 0 : i64, scratch_operands = 0 : i64, tpu.core_type = #tpu.core_type<tc>, window_params = [{transform_indices = @transform_0, window_bounds = array<i64: 8, 16>}, {pipeline_mode = #tpu.pipeline_mode<synchronous>, transform_indices = @transform_1, window_bounds = array<i64: 16, 32>}, {pipeline_mode = #tpu.pipeline_mode<synchronous>, transform_indices = @transform_2, window_bounds = array<i64: 1, 32>}, {pipeline_mode = #tpu.pipeline_mode<synchronous>, transform_indices = @transform_3, window_bounds = array<i64: 32, 32>}, {pipeline_mode = #tpu.pipeline_mode<synchronous>, transform_indices = @transform_4, window_bounds = array<i64: 1, 32>}, {pipeline_mode = #tpu.pipeline_mode<synchronous>, transform_indices = @transform_5, window_bounds = array<i64: 32, 128>}, {pipeline_mode = #tpu.pipeline_mode<synchronous>, transform_indices = @transform_6, window_bounds = array<i64: 1, 128>}, {transform_indices = @transform_7, window_bounds = array<i64: 8, 128>}]} {
    %c0 = arith.constant 0 : index
    %c0_0 = arith.constant 0 : index
    %0 = vector.load %arg1[%c0, %c0_0] : memref<8x16xf32, #tpu.memory_space<vmem>>, vector<8x16xf32>
    %1 = arith.truncf %0 : vector<8x16xf32> to vector<8x16xbf16>
    %c0_1 = arith.constant 0 : index
    %c0_2 = arith.constant 0 : index
    %2 = vector.load %arg2[%c0_1, %c0_2] : memref<16x32xbf16, #tpu.memory_space<vmem>>, vector<16x32xbf16>
    %cst = arith.constant dense<0.000000e+00> : vector<8x32xf32>
    %3 = tpu.matmul %1, %2, %cst {dimension_numbers = #tpu.dot_dimension_numbers<[1], [0], [0], [1], [0, 0, 1, 1], [], []>} : vector<8x16xbf16>, vector<16x32xbf16>, vector<8x32xf32> -> vector<8x32xf32>
    %c0_3 = arith.constant 0 : index
    %c0_4 = arith.constant 0 : index
    %4 = vector.load %arg3[%c0_3, %c0_4] : memref<1x32xf32, #tpu.memory_space<vmem>>, vector<1x32xf32>
    %5 = vector.broadcast %4 : vector<1x32xf32> to vector<8x32xf32>
    %6 = arith.addf %3, %5 : vector<8x32xf32>
    %cst_5 = arith.constant 0.000000e+00 : f32
    %7 = vector.broadcast %cst_5 : f32 to vector<8x32xf32>
    %8 = arith.maximumf %6, %7 : vector<8x32xf32>
    %9 = arith.truncf %8 : vector<8x32xf32> to vector<8x32xbf16>
    %c0_6 = arith.constant 0 : index
    %c0_7 = arith.constant 0 : index
    %10 = vector.load %arg4[%c0_6, %c0_7] : memref<32x32xbf16, #tpu.memory_space<vmem>>, vector<32x32xbf16>
    %cst_8 = arith.constant dense<0.000000e+00> : vector<8x32xf32>
    %11 = tpu.matmul %9, %10, %cst_8 {dimension_numbers = #tpu.dot_dimension_numbers<[1], [0], [0], [1], [0, 0, 1, 1], [], []>} : vector<8x32xbf16>, vector<32x32xbf16>, vector<8x32xf32> -> vector<8x32xf32>
    %c0_9 = arith.constant 0 : index
    %c0_10 = arith.constant 0 : index
    %12 = vector.load %arg5[%c0_9, %c0_10] : memref<1x32xf32, #tpu.memory_space<vmem>>, vector<1x32xf32>
    %13 = vector.broadcast %12 : vector<1x32xf32> to vector<8x32xf32>
    %14 = arith.addf %11, %13 : vector<8x32xf32>
    %cst_11 = arith.constant 0.000000e+00 : f32
    %15 = vector.broadcast %cst_11 : f32 to vector<8x32xf32>
    %16 = arith.maximumf %14, %15 : vector<8x32xf32>
    %17 = arith.truncf %16 : vector<8x32xf32> to vector<8x32xbf16>
    %c0_12 = arith.constant 0 : index
    %c0_13 = arith.constant 0 : index
    %18 = vector.load %arg6[%c0_12, %c0_13] : memref<32x128xbf16, #tpu.memory_space<vmem>>, vector<32x128xbf16>
    %cst_14 = arith.constant dense<0.000000e+00> : vector<8x128xf32>
    %19 = tpu.matmul %17, %18, %cst_14 {dimension_numbers = #tpu.dot_dimension_numbers<[1], [0], [0], [1], [0, 0, 1, 1], [], []>} : vector<8x32xbf16>, vector<32x128xbf16>, vector<8x128xf32> -> vector<8x128xf32>
    %c0_15 = arith.constant 0 : index
    %c0_16 = arith.constant 0 : index
    %20 = vector.load %arg7[%c0_15, %c0_16] : memref<1x128xf32, #tpu.memory_space<vmem>>, vector<1x128xf32>
    %21 = vector.broadcast %20 : vector<1x128xf32> to vector<8x128xf32>
    %22 = arith.addf %19, %21 : vector<8x128xf32>
    %23 = tpu.iota {dimensions = array<i32: 1>} : vector<1x128xi32>
    %c8_i32 = arith.constant 8 : i32
    %24 = vector.broadcast %c8_i32 : i32 to vector<1x128xi32>
    %25 = arith.cmpi sge, %23, %24 : vector<1x128xi32>
    %c12_i32 = arith.constant 12 : i32
    %26 = vector.broadcast %c12_i32 : i32 to vector<1x128xi32>
    %27 = arith.cmpi slt, %23, %26 : vector<1x128xi32>
    %28 = arith.andi %25, %27 : vector<1x128xi1>
    %cst_17 = arith.constant -2.000000e+01 : f32
    %cst_18 = arith.constant 2.000000e+00 : f32
    %29 = vector.broadcast %cst_17 : f32 to vector<8x128xf32>
    %30 = arith.maximumf %29, %22 : vector<8x128xf32>
    %31 = vector.broadcast %cst_18 : f32 to vector<8x128xf32>
    %32 = arith.minimumf %31, %30 : vector<8x128xf32>
    %33 = vector.shape_cast %28 : vector<1x128xi1> to vector<1x128xi1>
    %34 = vector.broadcast %33 : vector<1x128xi1> to vector<8x128xi1>
    %35 = arith.select %34, %32, %22 : vector<8x128xi1>, vector<8x128xf32>
    %c4_i32 = arith.constant 4 : i32
    %36 = vector.broadcast %c4_i32 : i32 to vector<1x128xi32>
    %37 = arith.cmpi sge, %23, %36 : vector<1x128xi32>
    %c8_i32_19 = arith.constant 8 : i32
    %38 = vector.broadcast %c8_i32_19 : i32 to vector<1x128xi32>
    %39 = arith.cmpi slt, %23, %38 : vector<1x128xi32>
    %40 = arith.andi %37, %39 : vector<1x128xi1>
    %41 = math.tanh %35 : vector<8x128xf32>
    %42 = vector.shape_cast %40 : vector<1x128xi1> to vector<1x128xi1>
    %43 = vector.broadcast %42 : vector<1x128xi1> to vector<8x128xi1>
    %44 = arith.select %43, %41, %35 : vector<8x128xi1>, vector<8x128xf32>
    %45 = arith.truncf %44 : vector<8x128xf32> to vector<8x128xbf16>
    %c0_20 = arith.constant 0 : index
    %c0_21 = arith.constant 0 : index
    %46 = vector.load %arg8[%c0_20, %c0_21] : memref<8x128xbf16, #tpu.memory_space<vmem>>, vector<8x128xbf16>
    tpu.vector_store %arg8[%c0_20, %c0_21], %45 {strides = array<i32>} : memref<8x128xbf16, #tpu.memory_space<vmem>>, vector<8x128xbf16>,
    return
  }
  func.func @transform_0(%arg0: i32) -> (i32, i32) {
    %c0_i32 = arith.constant 0 : i32
    %c0_i32_0 = arith.constant 0 : i32
    return %arg0, %c0_i32 : i32, i32
  }
  func.func @transform_1(%arg0: i32) -> (i32, i32) {
    %c0_i32 = arith.constant 0 : i32
    %c0_i32_0 = arith.constant 0 : i32
    %c0_i32_1 = arith.constant 0 : i32
    return %c0_i32, %c0_i32_0 : i32, i32
  }
  func.func @transform_2(%arg0: i32) -> (i32, i32) {
    %c0_i32 = arith.constant 0 : i32
    %c0_i32_0 = arith.constant 0 : i32
    %c0_i32_1 = arith.constant 0 : i32
    return %c0_i32, %c0_i32_0 : i32, i32
  }
  func.func @transform_3(%arg0: i32) -> (i32, i32) {
    %c0_i32 = arith.constant 0 : i32
    %c0_i32_0 = arith.constant 0 : i32
    %c0_i32_1 = arith.constant 0 : i32
    return %c0_i32, %c0_i32_0 : i32, i32
  }
  func.func @transform_4(%arg0: i32) -> (i32, i32) {
    %c0_i32 = arith.constant 0 : i32
    %c0_i32_0 = arith.constant 0 : i32
    %c0_i32_1 = arith.constant 0 : i32
    return %c0_i32, %c0_i32_0 : i32, i32
  }
  func.func @transform_5(%arg0: i32) -> (i32, i32) {
    %c0_i32 = arith.constant 0 : i32
    %c0_i32_0 = arith.constant 0 : i32
    %c0_i32_1 = arith.constant 0 : i32
    return %c0_i32, %c0_i32_0 : i32, i32
  }
  func.func @transform_6(%arg0: i32) -> (i32, i32) {
    %c0_i32 = arith.constant 0 : i32
    %c0_i32_0 = arith.constant 0 : i32
    %c0_i32_1 = arith.constant 0 : i32
    return %c0_i32, %c0_i32_0 : i32, i32
  }
  func.func @transform_7(%arg0: i32) -> (i32, i32) {
    %c0_i32 = arith.constant 0 : i32
    %c0_i32_0 = arith.constant 0 : i32
    return %arg0, %c0_i32 : i32, i32
  }
}

module attributes {stable_mosaic.version = 11 : i64} {
  func.func @_normal_policy_kernel(%arg0: i32, %arg1: memref<8x16xf32, #tpu.memory_space<vmem>>, %arg2: memref<16x32xbf16, #tpu.memory_space<vmem>>, %arg3: memref<1x32xf32, #tpu.memory_space<vmem>>, %arg4: memref<32x32xbf16, #tpu.memory_space<vmem>>, %arg5: memref<1x32xf32, #tpu.memory_space<vmem>>, %arg6: memref<32x128xbf16, #tpu.memory_space<vmem>>, %arg7: memref<1x128xf32, #tpu.memory_space<vmem>>, %arg8: memref<8x128xbf16, #tpu.memory_space<vmem>>) attributes {dimension_semantics = [#tpu.dimension_semantics<parallel>], iteration_bounds = array<i64: 1>, scalar_prefetch = 0 : i64, scratch_operands = 0 : i64, tpu.core_type = #tpu.core_type<tc>, window_params = [{transform_indices = @transform_0, window_bounds = array<i64: 8, 16>}, {pipeline_mode = #tpu.pipeline_mode<synchronous>, transform_indices = @transform_1, window_bounds = array<i64: 16, 32>}, {pipeline_mode = #tpu.pipeline_mode<synchronous>, transform_indices = @transform_2, window_bounds = array<i64: 1, 32>}, {pipeline_mode = #tpu.pipeline_mode<synchronous>, transform_indices = @transform_3, window_bounds = array<i64: 32, 32>}, {pipeline_mode = #tpu.pipeline_mode<synchronous>, transform_indices = @transform_4, window_bounds = array<i64: 1, 32>}, {pipeline_mode = #tpu.pipeline_mode<synchronous>, transform_indices = @transform_5, window_bounds = array<i64: 32, 128>}, {pipeline_mode = #tpu.pipeline_mode<synchronous>, transform_indices = @transform_6, window_bounds = array<i64: 1, 128>}, {transform_indices = @transform_7, window_bounds = array<i64: 8, 128>}]} {
    %c0 = arith.constant 0 : index
    %c0_0 = arith.constant 0 : index
    %0 = vector.load %arg1[%c0, %c0_0] : memref<8x16xf32, #tpu.memory_space<vmem>>, vector<8x16xf32>
    %1 = arith.truncf %0 : vector<8x16xf32> to vector<8x16xbf16>
    %c0_1 = arith.constant 0 : index
    %c0_2 = arith.constant 0 : index
    %2 = vector.load %arg2[%c0_1, %c0_2] : memref<16x32xbf16, #tpu.memory_space<vmem>>, vector<16x32xbf16>
    %cst = arith.constant dense<0.000000e+00> : vector<8x32xf32>
    %3 = tpu.matmul %1, %2, %cst {dimension_numbers = #tpu.dot_dimension_numbers<[1], [0], [0], [1], [0, 0, 1, 1], [], []>} : vector<8x16xbf16>, vector<16x32xbf16>, vector<8x32xf32> -> vector<8x32xf32>
    %c0_3 = arith.constant 0 : index
    %c0_4 = arith.constant 0 : index
    %4 = vector.load %arg3[%c0_3, %c0_4] : memref<1x32xf32, #tpu.memory_space<vmem>>, vector<1x32xf32>
    %5 = vector.broadcast %4 : vector<1x32xf32> to vector<8x32xf32>
    %6 = arith.addf %3, %5 : vector<8x32xf32>
    %cst_5 = arith.constant 0.000000e+00 : f32
    %7 = vector.broadcast %cst_5 : f32 to vector<8x32xf32>
    %8 = arith.maximumf %6, %7 : vector<8x32xf32>
    %9 = arith.truncf %8 : vector<8x32xf32> to vector<8x32xbf16>
    %c0_6 = arith.constant 0 : index
    %c0_7 = arith.constant 0 : index
    %10 = vector.load %arg4[%c0_6, %c0_7] : memref<32x32xbf16, #tpu.memory_space<vmem>>, vector<32x32xbf16>
    %cst_8 = arith.constant dense<0.000000e+00> : vector<8x32xf32>
    %11 = tpu.matmul %9, %10, %cst_8 {dimension_numbers = #tpu.dot_dimension_numbers<[1], [0], [0], [1], [0, 0, 1, 1], [], []>} : vector<8x32xbf16>, vector<32x32xbf16>, vector<8x32xf32> -> vector<8x32xf32>
    %c0_9 = arith.constant 0 : index
    %c0_10 = arith.constant 0 : index
    %12 = vector.load %arg5[%c0_9, %c0_10] : memref<1x32xf32, #tpu.memory_space<vmem>>, vector<1x32xf32>
    %13 = vector.broadcast %12 : vector<1x32xf32> to vector<8x32xf32>
    %14 = arith.addf %11, %13 : vector<8x32xf32>
    %cst_11 = arith.constant 0.000000e+00 : f32
    %15 = vector.broadcast %cst_11 : f32 to vector<8x32xf32>
    %16 = arith.maximumf %14, %15 : vector<8x32xf32>
    %17 = arith.truncf %16 : vector<8x32xf32> to vector<8x32xbf16>
    %c0_12 = arith.constant 0 : index
    %c0_13 = arith.constant 0 : index
    %18 = vector.load %arg6[%c0_12, %c0_13] : memref<32x128xbf16, #tpu.memory_space<vmem>>, vector<32x128xbf16>
    %cst_14 = arith.constant dense<0.000000e+00> : vector<8x128xf32>
    %19 = tpu.matmul %17, %18, %cst_14 {dimension_numbers = #tpu.dot_dimension_numbers<[1], [0], [0], [1], [0, 0, 1, 1], [], []>} : vector<8x32xbf16>, vector<32x128xbf16>, vector<8x128xf32> -> vector<8x128xf32>
    %c0_15 = arith.constant 0 : index
    %c0_16 = arith.constant 0 : index
    %20 = vector.load %arg7[%c0_15, %c0_16] : memref<1x128xf32, #tpu.memory_space<vmem>>, vector<1x128xf32>
    %21 = vector.broadcast %20 : vector<1x128xf32> to vector<8x128xf32>
    %22 = arith.addf %19, %21 : vector<8x128xf32>
    %23 = tpu.iota {dimensions = array<i32: 1>} : vector<1x128xi32>
    %c8_i32 = arith.constant 8 : i32
    %24 = vector.broadcast %c8_i32 : i32 to vector<1x128xi32>
    %25 = arith.cmpi sge, %23, %24 : vector<1x128xi32>
    %c12_i32 = arith.constant 12 : i32
    %26 = vector.broadcast %c12_i32 : i32 to vector<1x128xi32>
    %27 = arith.cmpi slt, %23, %26 : vector<1x128xi32>
    %28 = arith.andi %25, %27 : vector<1x128xi1>
    %cst_17 = arith.constant -2.000000e+01 : f32
    %cst_18 = arith.constant 2.000000e+00 : f32
    %29 = vector.broadcast %cst_17 : f32 to vector<8x128xf32>
    %30 = arith.maximumf %29, %22 : vector<8x128xf32>
    %31 = vector.broadcast %cst_18 : f32 to vector<8x128xf32>
    %32 = arith.minimumf %31, %30 : vector<8x128xf32>
    %33 = vector.shape_cast %28 : vector<1x128xi1> to vector<1x128xi1>
    %34 = vector.broadcast %33 : vector<1x128xi1> to vector<8x128xi1>
    %35 = arith.select %34, %32, %22 : vector<8x128xi1>, vector<8x128xf32>
    %c4_i32 = arith.constant 4 : i32
    %36 = vector.broadcast %c4_i32 : i32 to vector<1x128xi32>
    %37 = arith.cmpi sge, %23, %36 : vector<1x128xi32>
    %c8_i32_19 = arith.constant 8 : i32
    %38 = vector.broadcast %c8_i32_19 : i32 to vector<1x128xi32>
    %39 = arith.cmpi slt, %23, %38 : vector<1x128xi32>
    %40 = arith.andi %37, %39 : vector<1x128xi1>
    %41 = math.tanh %35 : vector<8x128xf32>
    %42 = vector.shape_cast %40 : vector<1x128xi1> to vector<1x128xi1>
    %43 = vector.broadcast %42 : vector<1x128xi1> to vector<8x128xi1>
    %44 = arith.select %43, %41, %35 : vector<8x128xi1>, vector<8x128xf32>
    %45 = arith.truncf %44 : vector<8x128xf32> to vector<8x128xbf16>
    %c0_20 = arith.constant 0 : index
    %c0_21 = arith.constant 0 : index
    %46 = vector.load %arg8[%c0_20, %c0_21] : memref<8x128xbf16, #tpu.memory_space<vmem>>, vector<8x128xbf16>
    tpu.vector_store %arg8[%c0_20, %c0_21], %45 {strides = array<i32>} : memref<8x128xbf16, #tpu.memory_space<vmem>>, vector<8x128xbf16>,
    return
  }
  func.func @transform_0(%arg0: i32) -> (i32, i32) {
    %c0_i32 = arith.constant 0 : i32
    %c0_i32_0 = arith.constant 0 : i32
    return %arg0, %c0_i32 : i32, i32
  }
  func.func @transform_1(%arg0: i32) -> (i32, i32) {
    %c0_i32 = arith.constant 0 : i32
    %c0_i32_0 = arith.constant 0 : i32
    %c0_i32_1 = arith.constant 0 : i32
    return %c0_i32, %c0_i32_0 : i32, i32
  }
  func.func @transform_2(%arg0: i32) -> (i32, i32) {
    %c0_i32 = arith.constant 0 : i32
    %c0_i32_0 = arith.constant 0 : i32
    %c0_i32_1 = arith.constant 0 : i32
    return %c0_i32, %c0_i32_0 : i32, i32
  }
  func.func @transform_3(%arg0: i32) -> (i32, i32) {
    %c0_i32 = arith.constant 0 : i32
    %c0_i32_0 = arith.constant 0 : i32
    %c0_i32_1 = arith.constant 0 : i32
    return %c0_i32, %c0_i32_0 : i32, i32
  }
  func.func @transform_4(%arg0: i32) -> (i32, i32) {
    %c0_i32 = arith.constant 0 : i32
    %c0_i32_0 = arith.constant 0 : i32
    %c0_i32_1 = arith.constant 0 : i32
    return %c0_i32, %c0_i32_0 : i32, i32
  }
  func.func @transform_5(%arg0: i32) -> (i32, i32) {
    %c0_i32 = arith.constant 0 : i32
    %c0_i32_0 = arith.constant 0 : i32
    %c0_i32_1 = arith.constant 0 : i32
    return %c0_i32, %c0_i32_0 : i32, i32
  }
  func.func @transform_6(%arg0: i32) -> (i32, i32) {
    %c0_i32 = arith.constant 0 : i32
    %c0_i32_0 = arith.constant 0 : i32
    %c0_i32_1 = arith.constant 0 : i32
    return %c0_i32, %c0_i32_0 : i32, i32
  }
  func.func @transform_7(%arg0: i32) -> (i32, i32) {
    %c0_i32 = arith.constant 0 : i32
    %c0_i32_0 = arith.constant 0 : i32
    return %arg0, %c0_i32 : i32, i32
  }
}

</mosaic_0001>

<bundles_post_ra>
// kernel: tpu_custom_call.1
= control target key start
LH: loop header
LB: loop body
LE: loop exit
PB: predicated region body
PF: predicated region fallthrough
CT: control target
= control target key end

     0   :  { %12 = vsyncpa [#allocation3], 0  ;;  %s567_s0 = inlined_call_operand.hbm [shape: f32[8,16], index: 0, kind: input, shape index: {}]   ;;  %s568_s1 = inlined_call_operand.hbm [shape: bf16[16,32], index: 1, kind: input, shape index: {}]   ;;  %s569_s2 = inlined_call_operand.vmem [shape: f32[1,32], index: 2, kind: input, shape index: {}]   ;;  %s570_s3 = inlined_call_operand.hbm [shape: bf16[32,32], index: 3, kind: input, shape index: {}]   ;;  %s571_s4 = inlined_call_operand.vmem [shape: f32[1,32], index: 4, kind: input, shape index: {}]   ;;  %s572_s5 = inlined_call_operand.vmem [shape: bf16[32,128], index: 5, kind: input, shape index: {}]   ;;  %s573_s6 = inlined_call_operand.vmem [shape: f32[1,128], index: 6, kind: input, shape index: {}]   ;;  %s574_s7 = inlined_call_operand.hbm [shape: bf16[8,128], index: 7, kind: output, shape index: {}]  }
   0x1   :  { %13 = vsyncpa [#allocation6], 0 }
   0x2   :  { %14 = vsyncpa [#allocation4], 0  ;;  %s450_s24 = smov [#allocation5]   ;;  %s356_s28 = scalar_lea.hbm %s568_s1, 128 }
   0x3   :  { %s30_s25 = sshll.u32 %s450_s24, 4  ;;  %p357_p0 = scmp.ne.s32.totalorder %s568_s1, %s356_s28  ;;  %s31_s25 = int_to_ptr.vmem [resolvable:$true] %s30_s25 }
   0x4   :  { %p360_p1 = scmp.lt.u32.totalorder %s356_s28, %s568_s1 }
   0x6   :  { %p362_p2 = pnand %p360_p1, %p357_p0 }
   0x8   :  { %365 = shalt.err (!%p362_p2)
}
   0x9   :  { %s366_s10 = scalar_lea.vmem %s31_s25, 128  ;;  %p371_p4 = scmp.lt.s32.totalorder %s31_s25, %s31_s25 }
   0xa   :  { %p367_p3 = scmp.ne.s32.totalorder %s31_s25, %s366_s10  ;;  %p372_p5 = scmp.lt.s32.totalorder %s366_s10, %s366_s10 }
   0xc   :  { %p373_p6 = por %p372_p5, %p371_p4 }
   0xe   :  { %p374_p7 = pnand %p373_p6, %p367_p3 }
  0x10   :  { %377 = shalt.err (!%p374_p7)
}
  0x11   :  { %s451_s11 = smov 64   ;;  %s452_s12 = smov 4  }
  0x12   :  { %36 = dma.hbm_to_vmem [thread:$0]  %s568_s1, 128, %s31_s25, [#allocation6], %s451_s11, %s451_s11, %s452_s12  }
  0x13   :  { %s453_s15 = smov [#allocation2]   ;;  %s454_s17 = smov [#allocation7]  }
  0x14   :  { %s21_s16 = sshll.u32 %s453_s15, 4  ;;  %s44_s18 = sshll.u32 %s454_s17, 4  ;;  %s22_s16 = int_to_ptr.vmem [resolvable:$true] %s21_s16  ;;  %s45_s18 = int_to_ptr.vmem [resolvable:$true] %s44_s18 }
  0x15   :  { %s378_s21 = scalar_lea.hbm %s567_s0, 128 }
  0x16   :  { %p379_p8 = scmp.ne.s32.totalorder %s567_s0, %s378_s21  ;;  %p382_p9 = scmp.lt.u32.totalorder %s378_s21, %s567_s0 }
  0x18   :  { %p384_p10 = pnand %p382_p9, %p379_p8 }
  0x1a   :  { %387 = shalt.err (!%p384_p10)
}
  0x1b   :  { %s388_s1 = scalar_lea.vmem %s22_s16, 128  ;;  %p393_p12 = scmp.lt.s32.totalorder %s22_s16, %s22_s16 }
  0x1c   :  { %p389_p11 = scmp.ne.s32.totalorder %s22_s16, %s388_s1  ;;  %p394_p13 = scmp.lt.s32.totalorder %s388_s1, %s388_s1 }
  0x1e   :  { %p395_p0 = por %p394_p13, %p393_p12 }
  0x20   :  { %p396_p1 = pnand %p395_p0, %p389_p11 }
  0x22   :  { %399 = shalt.err (!%p396_p1)
}
  0x23   :  { %24 = dma.hbm_to_vmem [thread:$0]  %s567_s0, 128, %s22_s16, [#allocation3]  }
  0x24   :  { %s400_s30 = scalar_lea.hbm %s570_s3, 256 }
  0x25   :  { %p401_p2 = scmp.ne.s32.totalorder %s570_s3, %s400_s30  ;;  %p404_p3 = scmp.lt.u32.totalorder %s400_s30, %s570_s3 }
  0x27   :  { %p406_p4 = pnand %p404_p3, %p401_p2 }
  0x29   :  { %409 = shalt.err (!%p406_p4)
}
  0x2a   :  { %s410_s14 = scalar_lea.vmem %s45_s18, 256  ;;  %p415_p6 = scmp.lt.s32.totalorder %s45_s18, %s45_s18 }
  0x2b   :  { %p411_p5 = scmp.ne.s32.totalorder %s45_s18, %s410_s14  ;;  %p416_p7 = scmp.lt.s32.totalorder %s410_s14, %s410_s14 }
  0x2d   :  { %p417_p8 = por %p416_p7, %p415_p6 }
  0x2f   :  { %p418_p9 = pnand %p417_p8, %p411_p5 }
  0x31   :  { %421 = shalt.err (!%p418_p9)
}
  0x32   :  { %50 = dma.hbm_to_vmem [thread:$0]  %s570_s3, 256, %s45_s18, [#allocation6], %s451_s11, %s451_s11, %s452_s12  }
  0x33   :  { %444 = dma.done.wait [#allocation3], 128  }
  0x34   :  { %445 = vsyncadd [#allocation3], 4294967168 }
  0x35   :  { %446 = dma.done.wait [#allocation6], 384  }
  0x36   :  { %447 = vsyncadd [#allocation6], 4294966912  ;;  %v455_v0 = vmov 0.0   ;;  %vm456_vm0 = vmmov 0   ;;  %v349_v1 = vld [vmem:[#allocation5] sm:$0xff]   ;;  %v67_v2 = vld [vmem:[#allocation2] sm:$0xff]  ;;  %v265_v24 = vlaneseq }
  0x37   :  { %319 = vmatprep.subr.bf16.mxu0 %v455_v0  ;;  %321 = vmatprep.mubr.msk.bf16.mxu0 %vm456_vm0, %v455_v0  ;;  %vm84_vm1 = vcmask 130048   ;;  %v68_v3 = vpack.c.bf16 %v67_v2, %v67_v2  ;;  %v350_v4 = vld [vmem:[#allocation7] sm:$0xff]   ;;  %v351_v5 = vld [vmem:[#allocation7 + $0x8] sm:$0xff]   ;;  %vm153_vm2 = vcmask 261120  }
  0x38   :  { %325 = vmatprep.subr.bf16.mxu1 %v455_v0  ;;  %329 = vmatprep.mubr.msk.bf16.mxu1 %vm456_vm0, %v455_v0  ;;  %v352_v6 = vld [vmem:[%s572_s5] sm:$0xff]   ;;  %v353_v15 = vld [vmem:[%s572_s5 + $0x8] sm:$0xff]   ;;  %v266_v25 = vand.u32 127, %v265_v24 }
  0x39   :  { %320 = vmatpush3.bf16.msra.mxu0 %v349_v1  ;;  %326 = vmatpush3.bf16.msra.mxu1 %v350_v4  ;;  %v300_v7 = vld [vmem:[%s569_s2] ss:$0 sm:$0xff] }
  0x3a   :  { %333 = vmatprep.subr.bf16.mxu0 %v455_v0  ;;  %327 = vmatprep.subr.bf16.mxu1 %v455_v0  ;;  %v303_v16 = vld [vmem:[%s571_s4] ss:$0 sm:$0xff]  ;;  %vm267_vm3 = vcmp.ge.s32.totalorder %v266_v25, 8  ;;  %vm268_vm4 = vcmp.lt.s32.totalorder %v266_v25, 12  ;;  %vm275_vm6 = vcmp.ge.s32.totalorder %v266_v25, 4  ;;  %vm276_vm7 = vcmp.lt.s32.totalorder %v266_v25, 8 }
  0x3b   :  { %v307_v26 = vld [vmem:[%s573_s6] ss:$0 sm:$0xff]  ;;  %vm269_vm5 = vmand %vm267_vm3, %vm268_vm4  ;;  %s457_s4 = smov [#allocation8]  }
  0x3c   :  { %322 = vmatmul.mubr.msk.bf16.vlgmr.msra.gmra.mrb[0].mxu0 %vm84_vm1, %v68_v3  ;;  %vm277_vm8 = vmand %vm275_vm6, %vm276_vm7  ;;  %s290_s5 = sshll.u32 %s457_s4, 4  ;;  %s291_s5 = int_to_ptr.vmem [resolvable:$true] %s290_s5 }
  0x3d   :  { %337 = vmatprep.mubr.msk.bf16.mxu0 %vm456_vm0, %v455_v0  ;;  %328 = vmatpush3.bf16.msra.mxu1 %v351_v5  ;;  %s422_s6 = scalar_lea.vmem %s291_s5, 64  ;;  %p427_p11 = scmp.lt.s32.totalorder %s291_s5, %s291_s5 }
  0x3e   :  { %334 = vmatpush3.bf16.msra.mxu0 %v352_v6  ;;  %p423_p10 = scmp.ne.s32.totalorder %s291_s5, %s422_s6  ;;  %p428_p12 = scmp.lt.s32.totalorder %s422_s6, %s422_s6 }
  0x3f   :  { %335 = vmatprep.subr.bf16.mxu0 %v455_v0 }
  0x40   :  { %p429_p13 = por %p428_p12, %p427_p11 }
  0x42   :  { %336 = vmatpush3.bf16.msra.mxu0 %v353_v15  ;;  %p430_p0 = pnand %p429_p13, %p423_p10 }
 0x10f   :  { %v122_v8 = vpop.f32.mrb[0].mxu0 }
 0x110   :  { %v123_v9 = vadd.f32 %v300_v7, %v122_v8  ;;  %v323_v10 = vpop.f32.mrb[1].mxu0 }
 0x111   :  { %v125_v11 = vpop.f32.mrb[2].mxu0 }
 0x112   :  { %v128_v12 = vmax.f32 %v123_v9, 0.0  ;;  %v324_v13 = vpop.f32.mrb[3].mxu0 }
 0x114   :  { %v129_v14 = vpack.c.bf16 %v128_v12, %v128_v12 }
 0x116   :  { %330 = vmatmul.mubr.msk.bf16.vlgmr.msra.gmra.mrb[0].mxu1 %vm153_vm2, %v129_v14 }
 0x1e9   :  { %v191_v17 = vpop.f32.mrb[0].mxu1 }
 0x1ea   :  { %v192_v18 = vadd.f32 %v303_v16, %v191_v17  ;;  %v331_v19 = vpop.f32.mrb[1].mxu1 }
 0x1eb   :  { %v194_v20 = vpop.f32.mrb[2].mxu1 }
 0x1ec   :  { %v197_v21 = vmax.f32 %v192_v18, 0.0  ;;  %v332_v22 = vpop.f32.mrb[3].mxu1 }
 0x1ee   :  { %v198_v23 = vpack.c.bf16 %v197_v21, %v197_v21 }
 0x1f0   :  { %338 = vmatmul.mubr.msk.bf16.vlgmr.msra.gmra.mrb[4].mxu0 %vm153_vm2, %v198_v23 }
 0x2c3   :  { %v259_v27 = vpop.f32.mrb[4].mxu0 }
 0x2c4   :  { %v260_v28 = vadd.f32 %v307_v26, %v259_v27  ;;  %v339_v29 = vpop.f32.mrb[5].mxu0 }
 0x2c5   :  { %v262_v30 = vpop.f32.mrb[6].mxu0 }
 0x2c6   :  { %v270_v31 = vmax.f32 %v260_v28, -20.0  ;;  %v340_v32 = vpop.f32.mrb[7].mxu0 }
 0x2c8   :  { %v271_v33 = vmin.f32 %v270_v31, 2.0 }
 0x2ca   :  { %v274_v34 = vsel %vm269_vm5, %v271_v33, %v260_v28 }
 0x2cb   :  { %354 = vtanh.f32 %v274_v34 }
 0x2d5   :  { %v355_v35 = vpop.eup %354 }
 0x2d6   :  { %v281_v36 = vsel %vm277_vm8, %v355_v35, %v274_v34 }
 0x2d7   :  { %v282_v37 = vpack.c.bf16 %v281_v36, %v281_v36 }
 0x2d9   :  { %283 = vst [vmem:[#allocation8] sm:$0xf] %v282_v37 }
 0x2da   :  { %433 = shalt.err (!%p430_p0)
}
 0x2db   :  { %s434_s24 = scalar_lea.hbm %s574_s7, 64 }
 0x2dc   :  { %p435_p1 = scmp.ne.s32.totalorder %s574_s7, %s434_s24  ;;  %p438_p2 = scmp.lt.u32.totalorder %s434_s24, %s574_s7 }
 0x2de   :  { %p440_p3 = pnand %p438_p2, %p435_p1 }
 0x2e0   :  { %443 = shalt.err (!%p440_p3)
}
 0x2e1   :  { %293 = dma.vmem_to_hbm [thread:$0]  %s291_s5, 64, %s574_s7, [#allocation4]  }
 0x2e2   :  { %448 = dma.done.wait [#allocation4], 64  }
 0x2e3   :  { %449 = vsyncadd [#allocation4], 4294967232 }
 0x2e4   :  { %297 = vsyncpa [#allocation3], 1 }
 0x2e5   :  { %298 = vsyncpa [#allocation6], 1 }
 0x2e6   :  { %299 = vsyncpa [#allocation4], 1 }

// kernel: tpu_custom_call.1
= control target key start
LH: loop header
LB: loop body
LE: loop exit
PB: predicated region body
PF: predicated region fallthrough
CT: control target
= control target key end

     0   :  { %12 = vsyncpa [#allocation3], 0  ;;  %s567_s0 = inlined_call_operand.hbm [shape: f32[8,16], index: 0, kind: input, shape index: {}]   ;;  %s568_s1 = inlined_call_operand.hbm [shape: bf16[16,32], index: 1, kind: input, shape index: {}]   ;;  %s569_s2 = inlined_call_operand.vmem [shape: f32[1,32], index: 2, kind: input, shape index: {}]   ;;  %s570_s3 = inlined_call_operand.hbm [shape: bf16[32,32], index: 3, kind: input, shape index: {}]   ;;  %s571_s4 = inlined_call_operand.vmem [shape: f32[1,32], index: 4, kind: input, shape index: {}]   ;;  %s572_s5 = inlined_call_operand.vmem [shape: bf16[32,128], index: 5, kind: input, shape index: {}]   ;;  %s573_s6 = inlined_call_operand.vmem [shape: f32[1,128], index: 6, kind: input, shape index: {}]   ;;  %s574_s7 = inlined_call_operand.hbm [shape: bf16[8,128], index: 7, kind: output, shape index: {}]  }
   0x1   :  { %13 = vsyncpa [#allocation6], 0 }
   0x2   :  { %14 = vsyncpa [#allocation4], 0  ;;  %s450_s24 = smov [#allocation5]   ;;  %s356_s28 = scalar_lea.hbm %s568_s1, 128 }
   0x3   :  { %s30_s25 = sshll.u32 %s450_s24, 4  ;;  %p357_p0 = scmp.ne.s32.totalorder %s568_s1, %s356_s28  ;;  %s31_s25 = int_to_ptr.vmem [resolvable:$true] %s30_s25 }
   0x4   :  { %p360_p1 = scmp.lt.u32.totalorder %s356_s28, %s568_s1 }
   0x6   :  { %p362_p2 = pnand %p360_p1, %p357_p0 }
   0x8   :  { %365 = shalt.err (!%p362_p2)
}
   0x9   :  { %s366_s10 = scalar_lea.vmem %s31_s25, 128  ;;  %p371_p4 = scmp.lt.s32.totalorder %s31_s25, %s31_s25 }
   0xa   :  { %p367_p3 = scmp.ne.s32.totalorder %s31_s25, %s366_s10  ;;  %p372_p5 = scmp.lt.s32.totalorder %s366_s10, %s366_s10 }
   0xc   :  { %p373_p6 = por %p372_p5, %p371_p4 }
   0xe   :  { %p374_p7 = pnand %p373_p6, %p367_p3 }
  0x10   :  { %377 = shalt.err (!%p374_p7)
}
  0x11   :  { %s451_s11 = smov 64   ;;  %s452_s12 = smov 4  }
  0x12   :  { %36 = dma.hbm_to_vmem [thread:$0]  %s568_s1, 128, %s31_s25, [#allocation6], %s451_s11, %s451_s11, %s452_s12  }
  0x13   :  { %s453_s15 = smov [#allocation2]   ;;  %s454_s17 = smov [#allocation7]  }
  0x14   :  { %s21_s16 = sshll.u32 %s453_s15, 4  ;;  %s44_s18 = sshll.u32 %s454_s17, 4  ;;  %s22_s16 = int_to_ptr.vmem [resolvable:$true] %s21_s16  ;;  %s45_s18 = int_to_ptr.vmem [resolvable:$true] %s44_s18 }
  0x15   :  { %s378_s21 = scalar_lea.hbm %s567_s0, 128 }
  0x16   :  { %p379_p8 = scmp.ne.s32.totalorder %s567_s0, %s378_s21  ;;  %p382_p9 = scmp.lt.u32.totalorder %s378_s21, %s567_s0 }
  0x18   :  { %p384_p10 = pnand %p382_p9, %p379_p8 }
  0x1a   :  { %387 = shalt.err (!%p384_p10)
}
  0x1b   :  { %s388_s1 = scalar_lea.vmem %s22_s16, 128  ;;  %p393_p12 = scmp.lt.s32.totalorder %s22_s16, %s22_s16 }
  0x1c   :  { %p389_p11 = scmp.ne.s32.totalorder %s22_s16, %s388_s1  ;;  %p394_p13 = scmp.lt.s32.totalorder %s388_s1, %s388_s1 }
  0x1e   :  { %p395_p0 = por %p394_p13, %p393_p12 }
  0x20   :  { %p396_p1 = pnand %p395_p0, %p389_p11 }
  0x22   :  { %399 = shalt.err (!%p396_p1)
}
  0x23   :  { %24 = dma.hbm_to_vmem [thread:$0]  %s567_s0, 128, %s22_s16, [#allocation3]  }
  0x24   :  { %s400_s30 = scalar_lea.hbm %s570_s3, 256 }
  0x25   :  { %p401_p2 = scmp.ne.s32.totalorder %s570_s3, %s400_s30  ;;  %p404_p3 = scmp.lt.u32.totalorder %s400_s30, %s570_s3 }
  0x27   :  { %p406_p4 = pnand %p404_p3, %p401_p2 }
  0x29   :  { %409 = shalt.err (!%p406_p4)
}
  0x2a   :  { %s410_s14 = scalar_lea.vmem %s45_s18, 256  ;;  %p415_p6 = scmp.lt.s32.totalorder %s45_s18, %s45_s18 }
  0x2b   :  { %p411_p5 = scmp.ne.s32.totalorder %s45_s18, %s410_s14  ;;  %p416_p7 = scmp.lt.s32.totalorder %s410_s14, %s410_s14 }
  0x2d   :  { %p417_p8 = por %p416_p7, %p415_p6 }
  0x2f   :  { %p418_p9 = pnand %p417_p8, %p411_p5 }
  0x31   :  { %421 = shalt.err (!%p418_p9)
}
  0x32   :  { %50 = dma.hbm_to_vmem [thread:$0]  %s570_s3, 256, %s45_s18, [#allocation6], %s451_s11, %s451_s11, %s452_s12  }
  0x33   :  { %444 = dma.done.wait [#allocation3], 128  }
  0x34   :  { %445 = vsyncadd [#allocation3], 4294967168 }
  0x35   :  { %446 = dma.done.wait [#allocation6], 384  }
  0x36   :  { %447 = vsyncadd [#allocation6], 4294966912  ;;  %v455_v0 = vmov 0.0   ;;  %vm456_vm0 = vmmov 0   ;;  %v349_v1 = vld [vmem:[#allocation5] sm:$0xff]   ;;  %v67_v2 = vld [vmem:[#allocation2] sm:$0xff]  ;;  %v265_v24 = vlaneseq }
  0x37   :  { %319 = vmatprep.subr.bf16.mxu0 %v455_v0  ;;  %321 = vmatprep.mubr.msk.bf16.mxu0 %vm456_vm0, %v455_v0  ;;  %vm84_vm1 = vcmask 130048   ;;  %v68_v3 = vpack.c.bf16 %v67_v2, %v67_v2  ;;  %v350_v4 = vld [vmem:[#allocation7] sm:$0xff]   ;;  %v351_v5 = vld [vmem:[#allocation7 + $0x8] sm:$0xff]   ;;  %vm153_vm2 = vcmask 261120  }
  0x38   :  { %325 = vmatprep.subr.bf16.mxu1 %v455_v0  ;;  %329 = vmatprep.mubr.msk.bf16.mxu1 %vm456_vm0, %v455_v0  ;;  %v352_v6 = vld [vmem:[%s572_s5] sm:$0xff]   ;;  %v353_v15 = vld [vmem:[%s572_s5 + $0x8] sm:$0xff]   ;;  %v266_v25 = vand.u32 127, %v265_v24 }
  0x39   :  { %320 = vmatpush3.bf16.msra.mxu0 %v349_v1  ;;  %326 = vmatpush3.bf16.msra.mxu1 %v350_v4  ;;  %v300_v7 = vld [vmem:[%s569_s2] ss:$0 sm:$0xff] }
  0x3a   :  { %333 = vmatprep.subr.bf16.mxu0 %v455_v0  ;;  %327 = vmatprep.subr.bf16.mxu1 %v455_v0  ;;  %v303_v16 = vld [vmem:[%s571_s4] ss:$0 sm:$0xff]  ;;  %vm267_vm3 = vcmp.ge.s32.totalorder %v266_v25, 8  ;;  %vm268_vm4 = vcmp.lt.s32.totalorder %v266_v25, 12  ;;  %vm275_vm6 = vcmp.ge.s32.totalorder %v266_v25, 4  ;;  %vm276_vm7 = vcmp.lt.s32.totalorder %v266_v25, 8 }
  0x3b   :  { %v307_v26 = vld [vmem:[%s573_s6] ss:$0 sm:$0xff]  ;;  %vm269_vm5 = vmand %vm267_vm3, %vm268_vm4  ;;  %s457_s4 = smov [#allocation8]  }
  0x3c   :  { %322 = vmatmul.mubr.msk.bf16.vlgmr.msra.gmra.mrb[0].mxu0 %vm84_vm1, %v68_v3  ;;  %vm277_vm8 = vmand %vm275_vm6, %vm276_vm7  ;;  %s290_s5 = sshll.u32 %s457_s4, 4  ;;  %s291_s5 = int_to_ptr.vmem [resolvable:$true] %s290_s5 }
  0x3d   :  { %337 = vmatprep.mubr.msk.bf16.mxu0 %vm456_vm0, %v455_v0  ;;  %328 = vmatpush3.bf16.msra.mxu1 %v351_v5  ;;  %s422_s6 = scalar_lea.vmem %s291_s5, 64  ;;  %p427_p11 = scmp.lt.s32.totalorder %s291_s5, %s291_s5 }
  0x3e   :  { %334 = vmatpush3.bf16.msra.mxu0 %v352_v6  ;;  %p423_p10 = scmp.ne.s32.totalorder %s291_s5, %s422_s6  ;;  %p428_p12 = scmp.lt.s32.totalorder %s422_s6, %s422_s6 }
  0x3f   :  { %335 = vmatprep.subr.bf16.mxu0 %v455_v0 }
  0x40   :  { %p429_p13 = por %p428_p12, %p427_p11 }
  0x42   :  { %336 = vmatpush3.bf16.msra.mxu0 %v353_v15  ;;  %p430_p0 = pnand %p429_p13, %p423_p10 }
 0x10f   :  { %v122_v8 = vpop.f32.mrb[0].mxu0 }
 0x110   :  { %v123_v9 = vadd.f32 %v300_v7, %v122_v8  ;;  %v323_v10 = vpop.f32.mrb[1].mxu0 }
 0x111   :  { %v125_v11 = vpop.f32.mrb[2].mxu0 }
 0x112   :  { %v128_v12 = vmax.f32 %v123_v9, 0.0  ;;  %v324_v13 = vpop.f32.mrb[3].mxu0 }
 0x114   :  { %v129_v14 = vpack.c.bf16 %v128_v12, %v128_v12 }
 0x116   :  { %330 = vmatmul.mubr.msk.bf16.vlgmr.msra.gmra.mrb[0].mxu1 %vm153_vm2, %v129_v14 }
 0x1e9   :  { %v191_v17 = vpop.f32.mrb[0].mxu1 }
 0x1ea   :  { %v192_v18 = vadd.f32 %v303_v16, %v191_v17  ;;  %v331_v19 = vpop.f32.mrb[1].mxu1 }
 0x1eb   :  { %v194_v20 = vpop.f32.mrb[2].mxu1 }
 0x1ec   :  { %v197_v21 = vmax.f32 %v192_v18, 0.0  ;;  %v332_v22 = vpop.f32.mrb[3].mxu1 }
 0x1ee   :  { %v198_v23 = vpack.c.bf16 %v197_v21, %v197_v21 }
 0x1f0   :  { %338 = vmatmul.mubr.msk.bf16.vlgmr.msra.gmra.mrb[4].mxu0 %vm153_vm2, %v198_v23 }
 0x2c3   :  { %v259_v27 = vpop.f32.mrb[4].mxu0 }
 0x2c4   :  { %v260_v28 = vadd.f32 %v307_v26, %v259_v27  ;;  %v339_v29 = vpop.f32.mrb[5].mxu0 }
 0x2c5   :  { %v262_v30 = vpop.f32.mrb[6].mxu0 }
 0x2c6   :  { %v270_v31 = vmax.f32 %v260_v28, -20.0  ;;  %v340_v32 = vpop.f32.mrb[7].mxu0 }
 0x2c8   :  { %v271_v33 = vmin.f32 %v270_v31, 2.0 }
 0x2ca   :  { %v274_v34 = vsel %vm269_vm5, %v271_v33, %v260_v28 }
 0x2cb   :  { %354 = vtanh.f32 %v274_v34 }
 0x2d5   :  { %v355_v35 = vpop.eup %354 }
 0x2d6   :  { %v281_v36 = vsel %vm277_vm8, %v355_v35, %v274_v34 }
 0x2d7   :  { %v282_v37 = vpack.c.bf16 %v281_v36, %v281_v36 }
 0x2d9   :  { %283 = vst [vmem:[#allocation8] sm:$0xf] %v282_v37 }
 0x2da   :  { %433 = shalt.err (!%p430_p0)
}
 0x2db   :  { %s434_s24 = scalar_lea.hbm %s574_s7, 64 }
 0x2dc   :  { %p435_p1 = scmp.ne.s32.totalorder %s574_s7, %s434_s24  ;;  %p438_p2 = scmp.lt.u32.totalorder %s434_s24, %s574_s7 }
 0x2de   :  { %p440_p3 = pnand %p438_p2, %p435_p1 }
 0x2e0   :  { %443 = shalt.err (!%p440_p3)
}
 0x2e1   :  { %293 = dma.vmem_to_hbm [thread:$0]  %s291_s5, 64, %s574_s7, [#allocation4]  }
 0x2e2   :  { %448 = dma.done.wait [#allocation4], 64  }
 0x2e3   :  { %449 = vsyncadd [#allocation4], 4294967232 }
 0x2e4   :  { %297 = vsyncpa [#allocation3], 1 }
 0x2e5   :  { %298 = vsyncpa [#allocation6], 1 }
 0x2e6   :  { %299 = vsyncpa [#allocation4], 1 }

</bundles_post_ra>
